<compile_context>
chip_gen: v7x
topology: tpu7x:2x2x1
jax: 0.10.0
libtpu: 0.0.40
codegen_flags: <defaults>
</compile_context>

<pallas_src>
import functools

import jax
import jax.numpy as jnp
import numpy as np
from jax import lax
from jax.experimental import pallas as pl
from jax.experimental.pallas import tpu as pltpu


def _round_up(x, m):
    return (x + m - 1) // m * m


def _write_posneg_stack(x, stk_ref, cin):
    """Write [clamp(x,min=0); clamp(x,max=0)] stacked on the sublane axis."""
    stk_ref[0:cin, :] = jnp.maximum(x, 0.0).astype(stk_ref.dtype)
    # Explicit minimum so non-finite inputs match torch.clamp semantics.
    stk_ref[cin:2 * cin, :] = jnp.minimum(x, 0.0).astype(stk_ref.dtype)


def _posneg_conv_im2col_kernel(x_ref, w_ref, bias_ref, out_ref,
                               stk_ref, col_ref, *,
                               cin, kh_size, kw_size, wp, span_tile):
    """One (batch, span-tile) step: fused im2col + a single MXU matmul.

    x_ref   : (1, 1, Cin, win_len)      halo window of padded flattened input
    w_ref   : (Cout, KH*KW*2*Cin)       tap-major [w_pos | w_neg] (resident)
    bias_ref: (Cout, 1)
    out_ref : (1, Cout, span_tile)
    stk_ref : (2*Cin, win_len)          scratch (mxu dtype)
    col_ref : (KH*KW*2*Cin, span_tile)  scratch (mxu dtype)
    """
    _write_posneg_stack(x_ref[0, 0], stk_ref, cin)
    for kh in range(kh_size):
        for kw in range(kw_size):
            t = kh * kw_size + kw
            off = kh * wp + kw                      # static lane offset
            col_ref[t * 2 * cin:(t + 1) * 2 * cin, :] = \
                stk_ref[:, off:off + span_tile]
    acc = jnp.dot(w_ref[...], col_ref[...], preferred_element_type=jnp.float32)
    out_ref[0] = (acc + bias_ref[...]).astype(out_ref.dtype)


def _posneg_conv_accum_kernel(x_ref, w_ref, bias_ref, out_ref, stk_ref, *,
                              cin, kh_size, kw_size, wp, span_tile):
    """Per-tap accumulating matmuls (no im2col scratch); best when 2*Cin >= 128."""
    _write_posneg_stack(x_ref[0, 0], stk_ref, cin)
    cout = out_ref.shape[1]
    acc = jnp.zeros((cout, span_tile), jnp.float32)
    for kh in range(kh_size):
        for kw in range(kw_size):
            t = kh * kw_size + kw
            off = kh * wp + kw                      # static lane offset
            acc = acc + jnp.dot(w_ref[:, t * 2 * cin:(t + 1) * 2 * cin],
                                stk_ref[:, off:off + span_tile],
                                preferred_element_type=jnp.float32)
    out_ref[0] = (acc + bias_ref[...]).astype(out_ref.dtype)


def posnegconv_forward(x_nchw, weight_oihw, bias, *, padding=1,
                       ignorebias=False, mxu_dtype=jnp.float32,
                       span_tile=None, path=None):
    """Pallas posnegconv forward. x: NCHW, weight: (Cout, Cin, KH, KW).

    Assumes stride=1, dilation=1, groups=1 (the module's conv config).
    mxu_dtype: jnp.float32 (default / v5e) or jnp.bfloat16 (v6e/v7x fast path).
    """
    n, cin, h, w = x_nchw.shape
    cout, _, kh, kw = weight_oihw.shape
    hp, wp = h + 2 * padding, w + 2 * padding
    h_out, w_out = hp - kh + 1, wp - kw + 1
    span = h_out * wp                                   # flattened output length
    max_off = (kh - 1) * wp + (kw - 1)

    # ---- span tiling: lane dim padded to a multiple of 128, capped per tile ----
    if span_tile is None:
        span_tile = min(_round_up(span, 128), 2048)
    span_tile = _round_up(span_tile, 128)
    n_span = pl.cdiv(span, span_tile)
    span_pad = n_span * span_tile
    win_len = _round_up(max_off + span_tile, 128)       # per-tile halo window

    # ---- path selection ----
    if path is None:
        path = "im2col" if 2 * cin < 128 else "accumulate"
    use_im2col = (path == "im2col")

    # ---- layout glue (XLA): pad, flatten, build overlapped halo windows ----
    x_p = jnp.pad(x_nchw.astype(jnp.float32),
                  ((0, 0), (0, 0), (padding, padding), (padding, padding)))
    x_flat = x_p.reshape(n, cin, hp * wp)
    l_need = (n_span - 1) * span_tile + win_len
    x_flat = jnp.pad(x_flat, ((0, 0), (0, 0), (0, max(0, l_need - hp * wp))))
    # Overlapped windows keep all in-kernel tap offsets static; duplication is
    # only ~ (1 + max_off/span_tile)x of the input.
    x_win = jnp.stack([x_flat[:, :, s * span_tile:s * span_tile + win_len]
                       for s in range(n_span)], axis=1)  # (N, n_span, Cin, win)

    # weights: (Cout, Cin, KH, KW) -> tap-major [pos|neg] matrix (Cout, K)
    kmat = kh * kw * 2 * cin
    w_pos = jnp.maximum(weight_oihw, 0.0)
    w_neg = jnp.minimum(weight_oihw, 0.0)
    w_stk = jnp.concatenate([w_pos, w_neg], axis=1)       # (Cout, 2Cin, KH, KW)
    w_mat = jnp.transpose(w_stk, (0, 2, 3, 1)).reshape(cout, kmat).astype(mxu_dtype)

    if ignorebias or bias is None:
        # NOTE: PyTorch's clone keeps a default-initialized bias when
        # conv.bias is None and ignorebias=False; we treat "no bias" as zero.
        bias_col = jnp.zeros((cout, 1), jnp.float32)
    else:
        # clamp(b,min=0) + clamp(b,max=0) == b ; kept explicit for fidelity
        bias_col = (jnp.maximum(bias, 0.0) + jnp.minimum(bias, 0.0)
                    ).reshape(cout, 1).astype(jnp.float32)

    kern_kwargs = dict(cin=cin, kh_size=kh, kw_size=kw, wp=wp,
                       span_tile=span_tile)
    scratch = [pltpu.VMEM((2 * cin, win_len), mxu_dtype)]
    if use_im2col:
        kernel = functools.partial(_posneg_conv_im2col_kernel, **kern_kwargs)
        scratch.append(pltpu.VMEM((kmat, span_tile), mxu_dtype))
    else:
        kernel = functools.partial(_posneg_conv_accum_kernel, **kern_kwargs)

    itm = jnp.dtype(mxu_dtype).itemsize
    vmem_need = (2 * cin * win_len * 4                     # input window (x2 buf)
                 + 2 * cout * kmat * itm                   # resident weights
                 + 2 * cout * span_tile * 4                # output (x2 buf)
                 + 2 * cin * win_len * itm                 # stk scratch
                 + (kmat * span_tile * itm if use_im2col else 0)
                 + (1 << 20))
    # Explicit scoped-VMEM limit (defaults are 16/32 MiB); keep headroom for
    # v7x's 64 MiB physical VMEM while allowing large tiles on v5e/v6e.
    vmem_limit = int(min(max(2 * vmem_need, 32 << 20), 96 << 20))

    flops = int(2 * n * n_span * cout * kmat * span_tile)
    bytes_accessed = int(x_win.size * 4 + w_mat.size * itm
                         + cout * 4 + n * cout * span_pad * 4)
    cost = pl.CostEstimate(flops=flops, transcendentals=0,
                           bytes_accessed=bytes_accessed)

    out_flat = pl.pallas_call(
        kernel,
        out_shape=jax.ShapeDtypeStruct((n, cout, span_pad), jnp.float32),
        grid_spec=pltpu.PrefetchScalarGridSpec(
            num_scalar_prefetch=0,
            grid=(n, n_span),
            in_specs=[
                pl.BlockSpec((1, 1, cin, win_len), lambda b, s: (b, s, 0, 0)),
                # TODO(synk): pipeline_mode=pl.Buffered(1) on the resident
                # weight/bias blocks would save one extra buffer on v7x.
                pl.BlockSpec((cout, kmat), lambda b, s: (0, 0)),
                pl.BlockSpec((cout, 1), lambda b, s: (0, 0)),
            ],
            out_specs=pl.BlockSpec((1, cout, span_tile), lambda b, s: (b, 0, s)),
            scratch_shapes=scratch),
        compiler_params=pltpu.CompilerParams(
            dimension_semantics=("parallel", "parallel"),
            vmem_limit_bytes=vmem_limit),
        cost_estimate=cost,
    )(x_win, w_mat, bias_col)

    # TODO(synk): for late layers with span << 128, block several batch images
    # per grid step to fill the MXU lane dimension and amortize step overhead.

    # (N, Cout, span_pad) -> valid span -> (N, Cout, H_out, Wp) -> drop junk cols.
    out = out_flat[:, :, :span].reshape(n, cout, h_out, wp)[:, :, :, :w_out]
    return out


def _reference(x_nchw, weight_oihw, bias, *, padding=1, ignorebias=False):
    """Pure-JAX reference using lax.conv (NCHW/OIHW)."""
    dn = lax.conv_dimension_numbers(x_nchw.shape, weight_oihw.shape,
                                    ("NCHW", "OIHW", "NCHW"))
    w_pos = jnp.maximum(weight_oihw, 0.0)
    w_neg = jnp.minimum(weight_oihw, 0.0)
    vp = lax.conv_general_dilated(jnp.maximum(x_nchw, 0.0), w_pos, (1, 1),
                                  [(padding, padding)] * 2, dimension_numbers=dn)
    vn = lax.conv_general_dilated(jnp.minimum(x_nchw, 0.0), w_neg, (1, 1),
                                  [(padding, padding)] * 2, dimension_numbers=dn)
    if not ignorebias and bias is not None:
        vp = vp + jnp.maximum(bias, 0.0)[None, :, None, None]
        vn = vn + jnp.minimum(bias, 0.0)[None, :, None, None]
    return vp + vn


if __name__ == "__main__":
    key = jax.random.PRNGKey(0)
    k_x, k_w, k_b = jax.random.split(key, 3)

    N, CIN, H, W = 2, 4, 16, 16
    COUT, KH, KW = 8, 3, 3

    x = jax.random.normal(k_x, (N, CIN, H, W), jnp.float32)
    weight = jax.random.normal(k_w, (COUT, CIN, KH, KW), jnp.float32) * 0.1
    bias = jax.random.normal(k_b, (COUT,), jnp.float32) * 0.1

    ref = _reference(x, weight, bias, padding=1, ignorebias=False)
    ref_nb = _reference(x, weight, bias, padding=1, ignorebias=True)

    # 1) f32, fused-im2col path (auto for small Cin), single span tile.
    out = jax.block_until_ready(
        posnegconv_forward(x, weight, bias, padding=1, ignorebias=False))
    np.testing.assert_allclose(np.asarray(out), np.asarray(ref),
                               rtol=1e-4, atol=1e-4)

    # 2) f32, per-tap accumulate path (no im2col scratch; default for Cin>=64).
    out = jax.block_until_ready(
        posnegconv_forward(x, weight, bias, padding=1, ignorebias=False,
                           path="accumulate"))
    np.testing.assert_allclose(np.asarray(out), np.asarray(ref),
                               rtol=1e-4, atol=1e-4)

    # 3) f32, multi-tile span grid (forced 128-wide tiles -> 3 span tiles).
    out = jax.block_until_ready(
        posnegconv_forward(x, weight, bias, padding=1, ignorebias=False,
                           span_tile=128))
    np.testing.assert_allclose(np.asarray(out), np.asarray(ref),
                               rtol=1e-4, atol=1e-4)

    # 4) bf16 MXU path (f32 accumulation) -- looser tolerance by design.
    out = jax.block_until_ready(
        posnegconv_forward(x, weight, bias, padding=1, ignorebias=False,
                           mxu_dtype=jnp.bfloat16))
    np.testing.assert_allclose(np.asarray(out), np.asarray(ref),
                               rtol=5e-2, atol=5e-2)

    # 5) ignorebias variant.
    out = jax.block_until_ready(
        posnegconv_forward(x, weight, bias, padding=1, ignorebias=True))
    np.testing.assert_allclose(np.asarray(out), np.asarray(ref_nb),
                               rtol=1e-4, atol=1e-4)

    print("KERNEL_OK")
</pallas_src>

<mosaic_0001>
module attributes {stable_mosaic.version = 11 : i64} {
  func.func @_posneg_conv_im2col_kernel(%arg0: i32, %arg1: i32, %arg2: memref<1x1x4x512xf32, #tpu.memory_space<vmem>>, %arg3: memref<8x72xf32, #tpu.memory_space<vmem>>, %arg4: memref<8x1xf32, #tpu.memory_space<vmem>>, %arg5: memref<1x8x384xf32, #tpu.memory_space<vmem>>, %arg6: memref<8x512xf32, #tpu.memory_space<vmem>>, %arg7: memref<72x384xf32, #tpu.memory_space<vmem>>) attributes {dimension_semantics = [#tpu.dimension_semantics<parallel>, #tpu.dimension_semantics<parallel>], iteration_bounds = array<i64: 2, 1>, scalar_prefetch = 0 : i64, scratch_operands = 2 : i64, tpu.core_type = #tpu.core_type<tc>, window_params = [{transform_indices = @transform_0, window_bounds = array<i64: 1, 1, 4, 512>}, {pipeline_mode = #tpu.pipeline_mode<synchronous>, transform_indices = @transform_1, window_bounds = array<i64: 8, 72>}, {pipeline_mode = #tpu.pipeline_mode<synchronous>, transform_indices = @transform_2, window_bounds = array<i64: 8, 1>}, {transform_indices = @transform_3, window_bounds = array<i64: 1, 8, 384>}]} {
    %c0 = arith.constant 0 : index
    %c0_0 = arith.constant 0 : index
    %c0_1 = arith.constant 0 : index
    %c0_2 = arith.constant 0 : index
    %0 = vector.load %arg2[%c0, %c0_0, %c0_1, %c0_2] : memref<1x1x4x512xf32, #tpu.memory_space<vmem>>, vector<1x1x4x512xf32>
    %1 = vector.shape_cast %0 : vector<1x1x4x512xf32> to vector<4x512xf32>
    %cst = arith.constant 0.000000e+00 : f32
    %2 = vector.broadcast %cst : f32 to vector<4x512xf32>
    %3 = arith.maximumf %1, %2 : vector<4x512xf32>
    %c0_3 = arith.constant 0 : index
    %c0_4 = arith.constant 0 : index
    %4 = vector.load %arg6[%c0_3, %c0_4] : memref<8x512xf32, #tpu.memory_space<vmem>>, vector<4x512xf32>
    tpu.vector_store %arg6[%c0_3, %c0_4], %3 {strides = array<i32>} : memref<8x512xf32, #tpu.memory_space<vmem>>, vector<4x512xf32>,
    %cst_5 = arith.constant 0.000000e+00 : f32
    %5 = vector.broadcast %cst_5 : f32 to vector<4x512xf32>
    %6 = arith.minimumf %1, %5 : vector<4x512xf32>
    %c4 = arith.constant 4 : index
    %c0_6 = arith.constant 0 : index
    %7 = vector.load %arg6[%c4, %c0_6] : memref<8x512xf32, #tpu.memory_space<vmem>>, vector<4x512xf32>
    tpu.vector_store %arg6[%c4, %c0_6], %6 {strides = array<i32>} : memref<8x512xf32, #tpu.memory_space<vmem>>, vector<4x512xf32>,
    %c0_7 = arith.constant 0 : index
    %c0_8 = arith.constant 0 : index
    %8 = vector.load %arg6[%c0_7, %c0_8] : memref<8x512xf32, #tpu.memory_space<vmem>>, vector<8x384xf32>
    %c0_9 = arith.constant 0 : index
    %c0_10 = arith.constant 0 : index
    %9 = vector.load %arg7[%c0_9, %c0_10] : memref<72x384xf32, #tpu.memory_space<vmem>>, vector<8x384xf32>
    tpu.vector_store %arg7[%c0_9, %c0_10], %8 {strides = array<i32>} : memref<72x384xf32, #tpu.memory_space<vmem>>, vector<8x384xf32>,
    %c0_11 = arith.constant 0 : index
    %c1 = arith.constant 1 : index
    %10 = vector.load %arg6[%c0_11, %c1] : memref<8x512xf32, #tpu.memory_space<vmem>>, vector<8x384xf32>
    %c8 = arith.constant 8 : index
    %c0_12 = arith.constant 0 : index
    %11 = vector.load %arg7[%c8, %c0_12] : memref<72x384xf32, #tpu.memory_space<vmem>>, vector<8x384xf32>
    tpu.vector_store %arg7[%c8, %c0_12], %10 {strides = array<i32>} : memref<72x384xf32, #tpu.memory_space<vmem>>, vector<8x384xf32>,
    %c0_13 = arith.constant 0 : index
    %c2 = arith.constant 2 : index
    %12 = vector.load %arg6[%c0_13, %c2] : memref<8x512xf32, #tpu.memory_space<vmem>>, vector<8x384xf32>
    %c16 = arith.constant 16 : index
    %c0_14 = arith.constant 0 : index
    %13 = vector.load %arg7[%c16, %c0_14] : memref<72x384xf32, #tpu.memory_space<vmem>>, vector<8x384xf32>
    tpu.vector_store %arg7[%c16, %c0_14], %12 {strides = array<i32>} : memref<72x384xf32, #tpu.memory_space<vmem>>, vector<8x384xf32>,
    %c0_15 = arith.constant 0 : index
    %c18 = arith.constant 18 : index
    %14 = vector.load %arg6[%c0_15, %c18] : memref<8x512xf32, #tpu.memory_space<vmem>>, vector<8x384xf32>
    %c24 = arith.constant 24 : index
    %c0_16 = arith.constant 0 : index
    %15 = vector.load %arg7[%c24, %c0_16] : memref<72x384xf32, #tpu.memory_space<vmem>>, vector<8x384xf32>
    tpu.vector_store %arg7[%c24, %c0_16], %14 {strides = array<i32>} : memref<72x384xf32, #tpu.memory_space<vmem>>, vector<8x384xf32>,
    %c0_17 = arith.constant 0 : index
    %c19 = arith.constant 19 : index
    %16 = vector.load %arg6[%c0_17, %c19] : memref<8x512xf32, #tpu.memory_space<vmem>>, vector<8x384xf32>
    %c32 = arith.constant 32 : index
    %c0_18 = arith.constant 0 : index
    %17 = vector.load %arg7[%c32, %c0_18] : memref<72x384xf32, #tpu.memory_space<vmem>>, vector<8x384xf32>
    tpu.vector_store %arg7[%c32, %c0_18], %16 {strides = array<i32>} : memref<72x384xf32, #tpu.memory_space<vmem>>, vector<8x384xf32>,
    %c0_19 = arith.constant 0 : index
    %c20 = arith.constant 20 : index
    %18 = vector.load %arg6[%c0_19, %c20] : memref<8x512xf32, #tpu.memory_space<vmem>>, vector<8x384xf32>
    %c40 = arith.constant 40 : index
    %c0_20 = arith.constant 0 : index
    %19 = vector.load %arg7[%c40, %c0_20] : memref<72x384xf32, #tpu.memory_space<vmem>>, vector<8x384xf32>
    tpu.vector_store %arg7[%c40, %c0_20], %18 {strides = array<i32>} : memref<72x384xf32, #tpu.memory_space<vmem>>, vector<8x384xf32>,
    %c0_21 = arith.constant 0 : index
    %c36 = arith.constant 36 : index
    %20 = vector.load %arg6[%c0_21, %c36] : memref<8x512xf32, #tpu.memory_space<vmem>>, vector<8x384xf32>
    %c48 = arith.constant 48 : index
    %c0_22 = arith.constant 0 : index
    %21 = vector.load %arg7[%c48, %c0_22] : memref<72x384xf32, #tpu.memory_space<vmem>>, vector<8x384xf32>
    tpu.vector_store %arg7[%c48, %c0_22], %20 {strides = array<i32>} : memref<72x384xf32, #tpu.memory_space<vmem>>, vector<8x384xf32>,
    %c0_23 = arith.constant 0 : index
    %c37 = arith.constant 37 : index
    %22 = vector.load %arg6[%c0_23, %c37] : memref<8x512xf32, #tpu.memory_space<vmem>>, vector<8x384xf32>
    %c56 = arith.constant 56 : index
    %c0_24 = arith.constant 0 : index
    %23 = vector.load %arg7[%c56, %c0_24] : memref<72x384xf32, #tpu.memory_space<vmem>>, vector<8x384xf32>
    tpu.vector_store %arg7[%c56, %c0_24], %22 {strides = array<i32>} : memref<72x384xf32, #tpu.memory_space<vmem>>, vector<8x384xf32>,
    %c0_25 = arith.constant 0 : index
    %c38 = arith.constant 38 : index
    %24 = vector.load %arg6[%c0_25, %c38] : memref<8x512xf32, #tpu.memory_space<vmem>>, vector<8x384xf32>
    %c64 = arith.constant 64 : index
    %c0_26 = arith.constant 0 : index
    %25 = vector.load %arg7[%c64, %c0_26] : memref<72x384xf32, #tpu.memory_space<vmem>>, vector<8x384xf32>
    tpu.vector_store %arg7[%c64, %c0_26], %24 {strides = array<i32>} : memref<72x384xf32, #tpu.memory_space<vmem>>, vector<8x384xf32>,
    %c0_27 = arith.constant 0 : index
    %c0_28 = arith.constant 0 : index
    %26 = vector.load %arg3[%c0_27, %c0_28] : memref<8x72xf32, #tpu.memory_space<vmem>>, vector<8x72xf32>
    %c0_29 = arith.constant 0 : index
    %c0_30 = arith.constant 0 : index
    %27 = vector.load %arg7[%c0_29, %c0_30] : memref<72x384xf32, #tpu.memory_space<vmem>>, vector<72x384xf32>
    %cst_31 = arith.constant dense<0.000000e+00> : vector<8x384xf32>
    %28 = tpu.matmul %26, %27, %cst_31 {dimension_numbers = #tpu.dot_dimension_numbers<[1], [0], [0], [1], [0, 0, 1, 1], [], []>} : vector<8x72xf32>, vector<72x384xf32>, vector<8x384xf32> -> vector<8x384xf32>
    %c0_32 = arith.constant 0 : index
    %c0_33 = arith.constant 0 : index
    %29 = vector.load %arg4[%c0_32, %c0_33] : memref<8x1xf32, #tpu.memory_space<vmem>>, vector<8x1xf32>
    %30 = vector.broadcast %29 : vector<8x1xf32> to vector<8x384xf32>
    %31 = arith.addf %28, %30 : vector<8x384xf32>
    %c0_34 = arith.constant 0 : index
    %c0_35 = arith.constant 0 : index
    %c0_36 = arith.constant 0 : index
    %32 = vector.load %arg5[%c0_34, %c0_35, %c0_36] : memref<1x8x384xf32, #tpu.memory_space<vmem>>, vector<1x8x384xf32>
    %33 = vector.shape_cast %32 : vector<1x8x384xf32> to vector<8x384xf32>
    %34 = vector.shape_cast %31 : vector<8x384xf32> to vector<1x8x384xf32>
    tpu.vector_store %arg5[%c0_34, %c0_35, %c0_36], %34 {strides = array<i32>} : memref<1x8x384xf32, #tpu.memory_space<vmem>>, vector<1x8x384xf32>,
    return
  }
  func.func @transform_0(%arg0: i32, %arg1: i32) -> (i32, i32, i32, i32) {
    %c0_i32 = arith.constant 0 : i32
    %c0_i32_0 = arith.constant 0 : i32
    %c0_i32_1 = arith.constant 0 : i32
    return %arg0, %arg1, %c0_i32, %c0_i32_0 : i32, i32, i32, i32
  }
  func.func @transform_1(%arg0: i32, %arg1: i32) -> (i32, i32) {
    %c0_i32 = arith.constant 0 : i32
    %c0_i32_0 = arith.constant 0 : i32
    %c0_i32_1 = arith.constant 0 : i32
    return %c0_i32, %c0_i32_0 : i32, i32
  }
  func.func @transform_2(%arg0: i32, %arg1: i32) -> (i32, i32) {
    %c0_i32 = arith.constant 0 : i32
    %c0_i32_0 = arith.constant 0 : i32
    %c0_i32_1 = arith.constant 0 : i32
    return %c0_i32, %c0_i32_0 : i32, i32
  }
  func.func @transform_3(%arg0: i32, %arg1: i32) -> (i32, i32, i32) {
    %c0_i32 = arith.constant 0 : i32
    %c0_i32_0 = arith.constant 0 : i32
    return %arg0, %c0_i32, %arg1 : i32, i32, i32
  }
}

</mosaic_0001>

<bundles_post_ra>
// kernel: tpu_custom_call.1
= control target key start
LH: loop header
LB: loop body
LE: loop exit
PB: predicated region body
PF: predicated region fallthrough
CT: control target
= control target key end

     0   :  { %8 = vsyncpa [#allocation5], 0  ;;  %s1318_s0 = inlined_call_operand.hbm [shape: f32[2,1,4,512], index: 0, kind: input, shape index: {}]   ;;  %s1319_s1 = inlined_call_operand.vmem [shape: f32[8,72], index: 1, kind: input, shape index: {}]   ;;  %s1320_s2 = inlined_call_operand.vmem [shape: f32[8,1], index: 2, kind: input, shape index: {}]   ;;  %s1321_s3 = inlined_call_operand.hbm [shape: f32[2,8,384], index: 3, kind: output, shape index: {}]  }
   0x1   :  { %10 = vsyncpa [#allocation5 + $0x1], 0 }
   0x2   :  { %11 = vsyncpa [#allocation6], 0 }
   0x3   :  { %13 = vsyncpa [#allocation6 + $0x1], 0  ;;  %s1098_s12 = smov 0   ;;  %s1100_s13 = smov 0  }
   0x4   :  { %s1102_s14 = smov 0   ;;  %s1104_s15 = smov 0  }
   0x5   :  { %s1106_s16 = smov 0   ;;  %s1108_s17 = smov 0  }
   0x6 LB: > { %s729_s18 = sadd.s32 4294967295, %s1062_s17   ;;  %s730_s19 = sadd.s32 4294967294, %s1062_s17   ;;  %s1062_s17 = sphi %s1108_s17, %s19_s17   ;;  %s1058_s16 = sphi %s1106_s16, %s1337_s16   ;;  %s1054_s15 = sphi %s1104_s15, %s1336_s15   ;;  %s1050_s14 = sphi %s1102_s14, %s1335_s14   ;;  %s1046_s13 = sphi %s1100_s13, %s1334_s13   ;;  %s1042_s12 = sphi %s1098_s12, %s1333_s12  }
   0x7   : > { %s31_s20 = sadd.s32 1, %s1058_s16  ;;  %s40_s21 = sadd.s32 1, %s1050_s14 }
   0x8   : > { %p33_p0 = scmp.ge.s32.totalorder %s31_s20, 2  ;;  %p47_p1 = scmp.ne.s32.totalorder %s1050_s14, %s1046_s13 }
   0x9   : > { %p48_p2 = scmp.eq.s32.totalorder %s1062_s17, 0  ;;  %p53_p3 = scmp.ne.s32.totalorder %s1046_s13, %s1042_s12 }
   0xa   : > { %s1339_s20 = smov (%p33_p0, %s31_s20), 0  ;;  %p54_p5 = scmp.eq.s32.totalorder %s729_s18, 0 }
   0xb   : > { %p1139_p4 = por %p48_p2, %p47_p1  ;;  %s35_s23 = ssub.s32 %s1058_s16, %s1339_s20 }
   0xc   : > { %p121_p6 = scmp.eq.s32.totalorder %s729_s18, 1  ;;  %p38_p7 = scmp.eq.s32.totalorder %s35_s23, 0 }
   0xd   : > { %p1145_p8 = por %p54_p5, %p53_p3  ;;  %p127_p10 = scmp.eq.s32.totalorder %s730_s19, 1 }
   0xe   : > { %p1149_p9 = por %p121_p6, %p47_p1  ;;  %p817_p13 = scmp.lt.s32.totalorder %s1062_s17, 2 }
   0xf   : > { %s1154_s26 = scalar_select %p38_p7, %s1050_s14, %s40_s21  }
  0x10   : > { %s1325_s25 = scalar_select %p1149_p9, 1, 0 }
  0x11   : > { %p1156_p11 = por %p127_p10, %p53_p3  ;;  %s153_s28 = sand.u32 1, %s1050_s14  }
  0x12   : > { %s733_s29 = sshll.u32 %s153_s28, 4  ;;  %s743_s30 = sshll.u32 %s1058_s16, 8 }
  0x13   : > { %s1326_s27 = scalar_select %p1156_p11, 1, 0 }
  0x14   : > { %s1167_s6 = scalar_lea.hbm %s1318_s0, %s743_s30  ;;  %s157_s7 = scalar_lea.vmem [#allocation4], %s733_s29 }
  0x15   : > { %s167_s8 = sshll.u32 %s157_s7, 4  ;;  %p1173_p0 = pnand %p817_p13, %p1139_p4  ;;  %s1169_s8 = int_to_ptr.vmem [resolvable:$true] %s167_s8 }
  0x16   : > { %s154_s10 = scalar_lea.sflag [#allocation5], %s153_s28  ;;  %s950_s11 = scalar_lea.hbm %s1167_s6, 256 }
  0x17   : > { %p951_p3 = scmp.ne.s32.totalorder %s1167_s6, %s950_s11  ;;  %p952_p5 = pneg %p1173_p0 }
  0x18   : > { %s955_s21 = scalar_lea.hbm %s1318_s0, 512  ;;  %p956_p4 = scmp.lt.u32.totalorder %s1167_s6, %s1318_s0 }
  0x19   : > { %p953_p6 = pnand %p952_p5, %p951_p3  ;;  %p957_p10 = scmp.lt.u32.totalorder %s955_s21, %s950_s11 }
  0x1a   : > { %p959_p12 = scmp.lt.u32.totalorder %s950_s11, %s1167_s6 }
  0x1b   : > { %p954_p7 = pneg %p953_p6  ;;  %p958_p13 = por %p957_p10, %p956_p4 }
  0x1d   : > { %p960_p1 = por %p959_p12, %p958_p13 }
  0x1f   : > { %p961_p2 = pnand %p960_p1, %p954_p7 }
  0x21   : > { %964 = shalt.err (!%p961_p2)
}
  0x22   : > { %s965_s28 = scalar_lea.vmem %s1169_s8, 256  ;;  %s1064_s29 = smov [#allocation4]  }
  0x23   : > { %p966_p3 = scmp.ne.s32.totalorder %s1169_s8, %s965_s28  ;;  %s970_s30 = sshll.u32 %s1064_s29, 4  ;;  %s971_s30 = int_to_ptr.vmem [resolvable:$false] %s970_s30 }
  0x24   : > { %s972_s4 = scalar_lea.vmem %s971_s30, 512  ;;  %p973_p9 = scmp.lt.s32.totalorder %s1169_s8, %s971_s30 }
  0x25   : > { %p968_p6 = pnand %p966_p3, %p952_p5  ;;  %p974_p4 = scmp.lt.s32.totalorder %s972_s4, %s965_s28 }
  0x27   : > { %p969_p11 = pneg %p968_p6  ;;  %p975_p10 = por %p974_p4, %p973_p9 }
  0x29   : > { %p976_p12 = pnand %p975_p10, %p969_p11 }
  0x2b   : > { %979 = shalt.err (!%p976_p12)
}
  0x2c   : > { %812 = dma.hbm_to_vmem [thread:$0]  (!%p1173_p0), %s1167_s6, 256, %s1169_s8, %s154_s10  }
  0x2d   : > { %p1328_p1 = scmp.lt.s32.totalorder %s1062_s17, 3  ;;  %p1329_p2 = scmp.ge.s32.totalorder %s1062_s17, 1 }
  0x2f   : > { %p173_p5 = pnand %p1329_p2, %p1328_p1 }
  0x30   : > { %s1209_s5 = sand.u32 (!%p173_p5), 1, %s1046_s13  }
  0x31   : > { %176 = sbr.rel (%p173_p5) target bundleno = 451 (0x1c3), region = 32  ;;  %s737_s7 = sshll.u32 (!%p173_p5), %s1209_s5, 4 }
  0x32   : > { %s179_s11 = scalar_lea.sflag (!%p173_p5), [#allocation5], %s1209_s5  ;;  %s182_s18 = scalar_lea.vmem (!%p173_p5), [#allocation4], %s737_s7 }
  0x38   : > { %1033 = dma.done.wait (%p1145_p8), %s179_s11, 256  }
  0x39   : > { %1035 = vsyncadd (%p1145_p8), %s179_s11, 4294967040  ;;  %v206_v0 = vld [vmem:[%s182_s18] sm:$0xff]  ;;  %v207_v1 = vld [vmem:[%s182_s18 + $0x8] sm:$0xff]  ;;  %v1065_v10 = vmov 0.0|0.0   ;;  %s1066_s24 = smov 126   ;;  %s1067_s6 = smov 127  }
  0x3a   : > { %v208_v2 = vmax.f32 %v206_v0, 0.0  ;;  %v209_v3 = vmax.f32 %v207_v1, 0.0  ;;  %v220_v4 = vmin.f32 %v206_v0, 0.0  ;;  %v221_v5 = vmin.f32 %v207_v1, 0.0  ;;  %791 = vmatprep.subr.bf16.mxu1 %v1065_v10  ;;  %s1068_s8 = smov 110   ;;  %s1069_s9 = smov 108  }
  0x3b   : > { %s1070_s10 = smov 109   ;;  %v1071_v17 = vmov 0.0   ;;  %s1072_s19 = smov 91   ;;  %vm1074_vm0 = vmmov 0   ;;  %v1075_v18 = vmov 0   ;;  %v474_v19 = vld [vmem:[%s1320_s2] sm:$0xff] }
  0x3c   : > { %v212_v6 = vcombine.high %v208_v2, %v208_v2  ;;  %v213_v7 = vcombine.high %v209_v3, %v209_v3  ;;  %218 = vst [vmem:[#allocation2 + $0x10] sm:$0xf] %v209_v3  ;;  %v224_v8 = vcombine.low %v220_v4, %v220_v4  ;;  %v225_v9 = vcombine.low %v221_v5, %v221_v5  ;;  %s1073_s21 = smov 92   ;;  %s1076_s22 = smov 90  }
  0x3d   : > { %229 = vst [vmem:[#allocation2 + $0x8] sm:$0xf0] %v220_v4  ;;  %216 = vst [vmem:[#allocation2] sm:$0xf] %v208_v2  ;;  %548 = vmatprep.mubr.f32.mxu0 %v1071_v17  ;;  %772 = vmatprep.mubr.msk.f32.mxu1 %vm1074_vm0, %v1071_v17  ;;  %vm254_vm1 = vcmask 1039360   ;;  %vm280_vm2 = vcmask 1031168  }
  0x3e   : > { %231 = vst [vmem:[#allocation2 + $0x18] sm:$0xf0] %v221_v5  ;;  %217 = vst [vmem:[#allocation2 + $0x8] sm:$0xf] %v212_v6  ;;  %949 = vset.pattern.permute.xlu0 %v1075_v18  ;;  %vm306_vm3 = vcmask 900096   ;;  %vm332_vm4 = vcmask 891904  }
  0x3f   : > { %230 = vst [vmem:[#allocation2 + $0x10] sm:$0xf0] %v225_v9  ;;  %219 = vst [vmem:[#allocation2 + $0x18] sm:$0xf] %v213_v7  ;;  %vm358_vm5 = vcmask 883712   ;;  %vm384_vm6 = vcmask 752640  }
  0x40   : > { %228 = vst [vmem:[#allocation2] sm:$0xf0] %v224_v8  ;;  %vm410_vm7 = vcmask 744448   ;;  %vm436_vm8 = vcmask 736256   ;;  %vm480_vm9 = vcmask 588800   ;;  %s803_s4 = smul.u32 24, %s1209_s5 }
  0x41   : > { %s804_s7 = smul.u32 384, %s1054_s15  ;;  %s629_s15 = scalar_lea.sflag [#allocation6], %s1209_s5 }
  0x42   : > { %s204_s11 = scalar_lea.vmem [#allocation7], %s803_s4  ;;  %p1330_p9 = scmp.ne.s32.totalorder %s1325_s25, 0 }
  0x43   : > { %s645_s18 = sshll.u32 %s204_s11, 4  ;;  %s1271_s18 = int_to_ptr.vmem [resolvable:$true] %s645_s18 }
  0x45   : > { %v265_v11 = vld [vmem:[#allocation2 + $0x8] sm:$0xff] }
  0x46   : > { %v1218_v12 = vld [vmem:[#allocation2 + $0x10] sm:$0xff]  ;;  %v241_v15 = vld [vmem:[#allocation2 + $0x18] sm:$0xff] }
  0x47   : > { %v1220_v13 = vld [vmem:[#allocation2] sm:$0xff]  ;;  %v889_v14 = vpack.i.bf16 %v1218_v12, %v265_v11 }
  0x48   : > { %v884_v16 = vpack.i.bf16 %v241_v15, %v1220_v13 }
  0x49   : > { %890 = vrot.lane.b32.xlu1 %v889_v14, %s1066_s24  ;;  %880 = vrot.lane.b32.xlu0 %v889_v14, %s1067_s6 }
  0x4d   : > { %895 = vrot.lane.b32.xlu1 %v889_v14, %s1068_s8  ;;  %885 = vrot.lane.b32.xlu0 %v884_v16, %s1067_s6 }
  0x51   : > { %905 = vrot.lane.b32.xlu1 %v884_v16, %s1068_s8  ;;  %900 = vrot.lane.b32.xlu0 %v884_v16, %s1066_s24  ;;  %s1269_s8 = scalar_lea.hbm %s1321_s3, %s804_s7 }
  0x55   : > { %915 = vrot.lane.b32.xlu1 %v889_v14, %s1069_s9  ;;  %910 = vrot.lane.b32.xlu0 %v889_v14, %s1070_s10 }
  0x59   : > { %925 = vrot.lane.b32.xlu1 %v884_v16, %s1069_s9  ;;  %920 = vrot.lane.b32.xlu0 %v884_v16, %s1070_s10  ;;  %s980_s9 = scalar_lea.vmem %s1271_s18, 384  ;;  %s1077_s10 = smov [#allocation7]  }
  0x5a   : > { %p981_p8 = scmp.ne.s32.totalorder %s1271_s18, %s980_s9 }
  0x5c   : > { %p982_p11 = pnand %p981_p8, %p1330_p9 }
  0x5d   : > { %935 = vrot.lane.b32.xlu1 %v889_v14, %s1072_s19  ;;  %930 = vrot.lane.b32.xlu0 %v889_v14, %s1073_s21 }
  0x5e   : > { %p983_p0 = pneg %p982_p11 }
  0x61   : > { %945 = vrot.lane.b32.xlu1 %v884_v16, %s1072_s19  ;;  %940 = vrot.lane.b32.xlu0 %v884_v16, %s1073_s21  ;;  %s984_s19 = sshll.u32 %s1077_s10, 4  ;;  %s985_s19 = int_to_ptr.vmem [resolvable:$false] %s984_s19 }
  0x62   : > { %s986_s21 = scalar_lea.vmem %s985_s19, 768  ;;  %p987_p7 = scmp.lt.s32.totalorder %s1271_s18, %s985_s19 }
  0x63   : > { %p988_p13 = scmp.lt.s32.totalorder %s986_s21, %s980_s9 }
  0x65   : > { %432 = vrot.lane.b32.xlu1 %v1218_v12, %s1076_s22  ;;  %430 = vrot.lane.b32.xlu0 %v265_v11, %s1076_s22  ;;  %p989_p3 = por %p988_p13, %p987_p7 }
  0x67   : > { %p990_p6 = pnand %p989_p3, %p983_p0 }
  0x69   : > { %434 = vrot.lane.b32.xlu1 %v241_v15, %s1076_s22  ;;  %428 = vrot.lane.b32.xlu0 %v1220_v13, %s1076_s22 }
  0x6d   : > { %477 = vperm.xlu0 %949, %v474_v19  }
  0xbb   : > { %v891_v20 = vpop.permute.xlu1 %890  ;;  %v881_v21 = vpop.permute.xlu0 %880 }
  0xbc   : > { %v883_v22 = vunpack.i.h.bf16 %v881_v21  ;;  %v882_v23 = vunpack.i.l.bf16 %v881_v21  ;;  %v893_v24 = vunpack.i.h.bf16 %v891_v20  ;;  %v892_v25 = vunpack.i.l.bf16 %v891_v20 }
  0xbe   : > { %v256_v26 = vsel %vm254_vm1, %v882_v23, %v883_v22  ;;  %v282_v36 = vsel %vm280_vm2, %v892_v25, %v893_v24 }
  0xbf   : > { %v896_v27 = vpop.permute.xlu1 %895  ;;  %v886_v28 = vpop.permute.xlu0 %885  ;;  %v775_v29 = vpack.c.bf16 %v256_v26, %v265_v11 }
  0xc0   : > { %v898_v30 = vunpack.i.h.bf16 %v896_v27  ;;  %v897_v31 = vunpack.i.l.bf16 %v896_v27  ;;  %v888_v32 = vunpack.i.h.bf16 %v886_v28  ;;  %v887_v33 = vunpack.i.l.bf16 %v886_v28 }
  0xc1   : > { %776 = vmatprep.subr.bf16.mxu0 %v775_v29 }
  0xc2   : > { %v255_v34 = vsel %vm254_vm1, %v887_v33, %v882_v23  ;;  %v257_v35 = vsel %vm254_vm1, %v883_v22, %v888_v32  ;;  %v308_v37 = vsel %vm306_vm3, %v897_v31, %v898_v30 }
  0xc3   : > { %v906_v38 = vpop.permute.xlu1 %905  ;;  %v901_v39 = vpop.permute.xlu0 %900  ;;  %v777_v40 = vpack.c.bf16 %v255_v34, %v1220_v13  ;;  %v792_v41 = vpack.c.bf16 %v257_v35, %v1218_v12  ;;  %v779_v42 = vpack.c.bf16 %v308_v37, %v282_v36  ;;  %v446_v37 = vld [vmem:[%s1319_s1] sm:$0xff] }
  0xc4   : > { %v908_v43 = vunpack.i.h.bf16 %v906_v38  ;;  %v907_v44 = vunpack.i.l.bf16 %v906_v38  ;;  %v903_v45 = vunpack.i.h.bf16 %v901_v39  ;;  %v902_v46 = vunpack.i.l.bf16 %v901_v39 }
  0xc5   : > { %778 = vmatpush1.bf16.msra.mxu0 %v777_v40  ;;  %793 = vmatpush3.bf16.msra.mxu1 %v792_v41 }
  0xc6   : > { %780 = vmatprep.subr.bf16.mxu0 %v779_v42  ;;  %794 = vmatprep.subr.bf16.mxu1 %v1065_v10  ;;  %v281_v47 = vsel %vm280_vm2, %v902_v46, %v892_v25  ;;  %v307_v48 = vsel %vm306_vm3, %v907_v44, %v897_v31  ;;  %v283_v49 = vsel %vm280_vm2, %v893_v24, %v903_v45 }
  0xc7   : > { %v916_v50 = vpop.permute.xlu1 %915  ;;  %v911_v51 = vpop.permute.xlu0 %910  ;;  %v781_v52 = vpack.c.bf16 %v307_v48, %v281_v47  ;;  %v309_v53 = vsel %vm306_vm3, %v898_v30, %v908_v43 }
  0xc8   : > { %v918_v54 = vunpack.i.h.bf16 %v916_v50  ;;  %v917_v55 = vunpack.i.l.bf16 %v916_v50  ;;  %v913_v56 = vunpack.i.h.bf16 %v911_v51  ;;  %v912_v57 = vunpack.i.l.bf16 %v911_v51 }
  0xc9   : > { %782 = vmatpush1.bf16.msra.mxu0 %v781_v52  ;;  %v795_v58 = vpack.c.bf16 %v309_v53, %v283_v49 }
  0xca   : > { %v334_v59 = vsel %vm332_vm4, %v912_v57, %v913_v56  ;;  %v360_v60 = vsel %vm358_vm5, %v917_v55, %v918_v54 }
  0xcb   : > { %796 = vmatpush3.bf16.msra.mxu1 %v795_v58  ;;  %v926_v61 = vpop.permute.xlu1 %925  ;;  %v921_v62 = vpop.permute.xlu0 %920  ;;  %v783_v63 = vpack.c.bf16 %v360_v60, %v334_v59 }
  0xcc   : > { %v928_v0 = vunpack.i.h.bf16 %v926_v61  ;;  %v927_v1 = vunpack.i.l.bf16 %v926_v61  ;;  %v923_v2 = vunpack.i.h.bf16 %v921_v62  ;;  %v922_v3 = vunpack.i.l.bf16 %v921_v62  ;;  %797 = vmatprep.subr.bf16.mxu1 %v1065_v10 }
  0xcd   : > { %784 = vmatprep.subr.bf16.mxu0 %v783_v63 }
  0xce   : > { %v333_v4 = vsel %vm332_vm4, %v922_v3, %v912_v57  ;;  %v359_v5 = vsel %vm358_vm5, %v927_v1, %v917_v55  ;;  %v335_v6 = vsel %vm332_vm4, %v913_v56, %v923_v2  ;;  %v361_v7 = vsel %vm358_vm5, %v918_v54, %v928_v0 }
  0xcf   : > { %v936_v8 = vpop.permute.xlu1 %935  ;;  %v931_v9 = vpop.permute.xlu0 %930  ;;  %v785_v11 = vpack.c.bf16 %v359_v5, %v333_v4  ;;  %v798_v12 = vpack.c.bf16 %v361_v7, %v335_v6 }
  0xd0   : > { %v938_v13 = vunpack.i.h.bf16 %v936_v8  ;;  %v937_v14 = vunpack.i.l.bf16 %v936_v8  ;;  %v933_v15 = vunpack.i.h.bf16 %v931_v9  ;;  %v932_v16 = vunpack.i.l.bf16 %v931_v9 }
  0xd1   : > { %786 = vmatpush1.bf16.msra.mxu0 %v785_v11  ;;  %799 = vmatpush3.bf16.msra.mxu1 %v798_v12 }
  0xd2   : > { %v386_v18 = vsel %vm384_vm6, %v932_v16, %v933_v15  ;;  %v412_v19 = vsel %vm410_vm7, %v937_v14, %v938_v13  ;;  %800 = vmatprep.subr.bf16.mxu1 %v1065_v10 }
  0xd3   : > { %v946_v20 = vpop.permute.xlu1 %945  ;;  %v941_v21 = vpop.permute.xlu0 %940  ;;  %v787_v22 = vpack.c.bf16 %v412_v19, %v386_v18 }
  0xd4   : > { %v948_v23 = vunpack.i.h.bf16 %v946_v20  ;;  %v947_v24 = vunpack.i.l.bf16 %v946_v20  ;;  %v943_v25 = vunpack.i.h.bf16 %v941_v21  ;;  %v942_v26 = vunpack.i.l.bf16 %v941_v21 }
  0xd5   : > { %788 = vmatprep.subr.bf16.mxu0 %v787_v22 }
  0xd6   : > { %v385_v27 = vsel %vm384_vm6, %v942_v26, %v932_v16  ;;  %v411_v28 = vsel %vm410_vm7, %v947_v24, %v937_v14  ;;  %v387_v29 = vsel %vm384_vm6, %v933_v15, %v943_v25  ;;  %v413_v30 = vsel %vm410_vm7, %v938_v13, %v948_v23 }
  0xd7   : > { %v433_v31 = vpop.permute.xlu1 %432  ;;  %v431_v32 = vpop.permute.xlu0 %430  ;;  %v789_v10 = vpack.c.bf16 %v411_v28, %v385_v27  ;;  %v801_v33 = vpack.c.bf16 %v413_v30, %v387_v29 }
  0xd8   : > { %v438_v34 = vsel %vm436_vm8, %v431_v32, %v433_v31 }
  0xd9   : > { %790 = vmatpush1.bf16.msra.mxu0 %v789_v10  ;;  %802 = vmatpush3.bf16.msra.mxu1 %v801_v33 }
  0xda   : > { %500 = vmatprep.subr.mxu0 %v438_v34  ;;  %770 = vmatprep.subr.mxu1 %v1071_v17 }
  0xdb   : > { %v435_v35 = vpop.permute.xlu1 %434  ;;  %v429_v36 = vpop.permute.xlu0 %428 }
  0xdc   : > { %v437_v38 = vsel %vm436_vm8, %v429_v36, %v431_v32  ;;  %v439_v39 = vsel %vm436_vm8, %v433_v31, %v435_v35 }
  0xdd   : > { %501 = vmatpush1.msra.mxu0 %v437_v38  ;;  %771 = vmatpush3.msra.mxu1 %v439_v39 }
  0xde   : > { %738 = vmatmul.mubr.msk.f32.vlgmr.msra.gmra.mrb[0].mxu0 %vm480_vm9, %v446_v37  ;;  %773 = vmatmul.mubr.msk.f32.vlgmr.msra.gmra.mrb[0].mxu1 %vm480_vm9, %v446_v37 }
  0xec   : > { %v478_v40 = vpop.permute.xlu0 %477 }
 0x1b1   : > { %v550_v17 = vpop.f32.mrb[0].mxu0  ;;  %v621_v41 = vpop.f32.mrb[0].mxu1 }
 0x1b2   : > { %v551_v42 = vadd.f32 %v550_v17, %v478_v40  ;;  %v622_v43 = vadd.f32 %v621_v41, %v478_v40  ;;  %v552_v44 = vpop.f32.mrb[1].mxu0  ;;  %v774_v45 = vpop.f32.mrb[1].mxu1 }
 0x1b3   : > { %v553_v46 = vadd.f32 %v552_v44, %v478_v40 }
 0x1b4   : > { %625 = vst [vmem:[%s204_s11] sm:$0xff] %v551_v42  ;;  %627 = vst [vmem:[%s204_s11 + $0x10] sm:$0xff] %v622_v43 }
 0x1b5   : > { %626 = vst [vmem:[%s204_s11 + $0x8] sm:$0xff] %v553_v46 }
 0x1b6   : > { %993 = shalt.err (!%p990_p6)
}
 0x1b7   : > { %s994_s5 = scalar_lea.hbm %s1269_s8, 384  ;;  %s998_s28 = scalar_lea.hbm %s1321_s3, 768 }
 0x1b8   : > { %p995_p4 = scmp.ne.s32.totalorder %s1269_s8, %s994_s5  ;;  %p999_p1 = scmp.lt.u32.totalorder %s1269_s8, %s1321_s3 }
 0x1b9   : > { %p1000_p2 = scmp.lt.u32.totalorder %s998_s28, %s994_s5  ;;  %p1002_p8 = scmp.lt.u32.totalorder %s994_s5, %s1269_s8 }
 0x1ba   : > { %p996_p10 = pnand %p995_p4, %p1330_p9 }
 0x1bb   : > { %p1001_p5 = por %p1000_p2, %p999_p1 }
 0x1bc   : > { %p997_p12 = pneg %p996_p10 }
 0x1bd   : > { %p1003_p11 = por %p1002_p8, %p1001_p5 }
 0x1bf   : > { %p1004_p0 = pnand %p1003_p11, %p997_p12 }
 0x1c1   : > { %1007 = shalt.err (!%p1004_p0)
}
 0x1c2   : > { %807 = dma.vmem_to_hbm [thread:$0]  (%p1330_p9), %s1271_s18, 384, %s1269_s8, %s629_s15  }
 0x1c3 PF: > { %s657_s4 = sand.u32 1, %s1042_s12   ;;  %p1331_p7 = scmp.ne.s32.totalorder %s1326_s27, 0 }
 0x1c4   : > { %p1332_p13 = scmp.ge.s32.totalorder %s1062_s17, 2  ;;  %s658_s7 = scalar_lea.sflag [#allocation6], %s657_s4 }
 0x1c6   : > { %p814_p3 = pnand %p1332_p13, %p1331_p7 }
 0x1c8   : > { %1037 = dma.done.wait (!%p814_p3), %s658_s7, 384  }
 0x1c9   : > { %1039 = vsyncadd (!%p814_p3), %s658_s7, 4294966912  ;;  %s19_s17 = sadd.s32 1, %s1062_s17   ;;  %s1333_s12 = smov %s1046_s13 }
 0x1ca   : > { %p16_p6 = scmp.ge.s32.totalorder %s19_s17, 4   ;;  %s1334_s13 = smov %s1050_s14 }
 0x1cb   : > { %s1335_s14 = smov %s1154_s26  ;;  %s1336_s15 = smov %s1058_s16 }
 0x1cc   : > { %s1337_s16 = smov %s1339_s20  ;;  %18 = sbr.rel (!%p16_p6) target bundleno = 6 (0x6), region = 77 }
 0x1d3   :  { %663 = vsyncpa [#allocation5], 1 }
 0x1d4   :  { %665 = vsyncpa [#allocation5 + $0x1], 1 }
 0x1d5   :  { %666 = vsyncpa [#allocation6], 1 }
 0x1d6   :  { %668 = vsyncpa [#allocation6 + $0x1], 1 }

</bundles_post_ra>
